<compile_context>
chip_gen: v7x
topology: tpu7x:2x2x1
jax: 0.10.0
libtpu: 0.0.40
codegen_flags: <defaults>
</compile_context>

<pallas_src>
import functools

import jax
import jax.numpy as jnp
from jax.experimental import pallas as pl
from jax.experimental.pallas import tpu as pltpu


def _round_up(x, m):
    return ((x + m - 1) // m) * m


def _ternary_matmul_kernel(scal_ref, x_ref, w_ref, b_ref, o_ref, acc_ref, *, use_bf16):
    """Grid = (M/tm, N/tn, K/tk); K (reduction) axis last.

    scal_ref : SMEM (2,) f32   [threshold, alpha] (global stats, precomputed)
    x_ref    : VMEM (tm, tk)   activation tile
    w_ref    : VMEM (tk, tn)   weight tile, already transposed to [K, N]
    b_ref    : VMEM (1, tn)    bias tile
    o_ref    : VMEM (tm, tn)   output tile
    acc_ref  : VMEM (tm, tn)   f32 accumulator scratch
    """
    k = pl.program_id(2)

    @pl.when(k == 0)
    def _():
        acc_ref[...] = jnp.zeros_like(acc_ref)

    threshold = scal_ref[0]
    w = w_ref[...]
    # Ternary *sign pattern* S in {-1, 0, +1}.  alpha is factored out of the
    # matmul and applied once per output tile in the epilogue.
    pos = (w > threshold).astype(jnp.float32)
    neg = (w < -threshold).astype(jnp.float32)
    s = pos - neg

    x = x_ref[...]
    if use_bf16:
        # Optional, tolerance-dependent: S is exact in bf16, only x loses precision.
        x = x.astype(jnp.bfloat16)
        s = s.astype(jnp.bfloat16)

    acc_ref[...] += jnp.dot(x, s, preferred_element_type=jnp.float32)

    @pl.when(k == pl.num_programs(2) - 1)
    def _():
        alpha = scal_ref[1]
        o_ref[...] = (alpha * acc_ref[...] + b_ref[...]).astype(o_ref.dtype)


def ternary_linear(x, weight, bias=None, *, tm=256, tn=256, tk=512, use_bf16=False):
    """TWN linear forward: y = x @ ternarize(weight).T + bias.

    x:      [B, in_features]            f32
    weight: [out_features, in_features] f32  (PyTorch layout)
    bias:   [out_features] f32 or None
    """
    B, K = x.shape
    N, K2 = weight.shape
    assert K == K2, "in_features mismatch"

    # ---- scalar statistics over the UNPADDED weight (a global mean cannot be tiled) ----
    absw = jnp.abs(weight)
    threshold = 0.75 * jnp.mean(absw)
    maskf = (absw > threshold).astype(jnp.float32)
    cnt = jnp.sum(maskf)
    alpha = jnp.where(cnt > 0.0,
                      jnp.sum(absw * maskf) / jnp.maximum(cnt, 1.0),
                      jnp.float32(1.0))
    scalars = jnp.stack([threshold, alpha]).astype(jnp.float32)  # (2,) -> SMEM

    # ---- tile sizes (VMEM-safe across v5e/v6e/v7x) and padding to tile multiples ----
    tm = min(tm, _round_up(B, 8))
    tn = min(tn, _round_up(N, 128))
    tk = min(tk, _round_up(K, 128))
    Mp, Np, Kp = _round_up(B, tm), _round_up(N, tn), _round_up(K, tk)

    # Pre-transpose weight to [K, N]: natural (M,K)x(K,N) MXU contraction (no in-kernel
    # transpose) and lane-dense output stores along out_features.
    x_p = jnp.pad(x.astype(jnp.float32), ((0, Mp - B), (0, Kp - K)))
    w_p = jnp.pad(weight.T.astype(jnp.float32), ((0, Kp - K), (0, Np - N)))
    if bias is None:
        b_p = jnp.zeros((1, Np), jnp.float32)
    else:
        b_p = jnp.pad(bias.reshape(1, N).astype(jnp.float32), ((0, 0), (0, Np - N)))

    grid = (Mp // tm, Np // tn, Kp // tk)

    out = pl.pallas_call(
        functools.partial(_ternary_matmul_kernel, use_bf16=use_bf16),
        out_shape=jax.ShapeDtypeStruct((Mp, Np), jnp.float32),
        grid_spec=pltpu.PrefetchScalarGridSpec(
            num_scalar_prefetch=0,
            grid=grid,
            in_specs=[
                pl.BlockSpec(memory_space=pltpu.MemorySpace.SMEM),   # [threshold, alpha]
                pl.BlockSpec((tm, tk), lambda i, j, k: (i, k)),      # x tile
                pl.BlockSpec((tk, tn), lambda i, j, k: (k, j)),      # weight tile [K, N]
                pl.BlockSpec((1, tn), lambda i, j, k: (0, j)),       # bias tile
            ],
            out_specs=pl.BlockSpec((tm, tn), lambda i, j, k: (i, j)),
            scratch_shapes=[pltpu.VMEM((tm, tn), jnp.float32)],
        ),
        compiler_params=pltpu.CompilerParams(
            # M/N parallel (uses both v7x TensorCores); K is the reduction axis.
            dimension_semantics=("parallel", "parallel", "arbitrary"),
        ),
    )(scalars, x_p, w_p, b_p)

    return out[:B, :N]


def ternary_linear_ref(x, weight, bias=None):
    """Pure-JAX reference mirroring the PyTorch forward (high-precision matmul)."""
    absw = jnp.abs(weight)
    threshold = 0.75 * jnp.mean(absw)
    mask = absw > threshold
    cnt = jnp.sum(mask)
    alpha = jnp.where(cnt > 0,
                      jnp.sum(jnp.where(mask, absw, 0.0)) / jnp.maximum(cnt, 1),
                      1.0)
    w_t = jnp.where(weight > threshold, alpha,
                    jnp.where(weight < -threshold, -alpha, jnp.zeros_like(weight)))
    y = jax.lax.dot_general(x, w_t, (((1,), (1,)), ((), ())),
                            precision=jax.lax.Precision.HIGHEST,
                            preferred_element_type=jnp.float32)
    if bias is not None:
        y = y + bias
    return y
    # TODO(synk): the straight-through-estimator trick (w + (w_t - w).detach()) only
    # affects the backward pass; the forward output is identical, so it is a no-op here.


if __name__ == "__main__":
    key = jax.random.PRNGKey(0)
    k_x, k_w, k_b, k_x2, k_w2, k_b2 = jax.random.split(key, 6)

    # Test 1: toy shape (single-tile path after padding to (8, 128) blocks).
    batch, in_features, out_features = 8, 32, 16
    x = jax.random.normal(k_x, (batch, in_features), dtype=jnp.float32)
    weight = jax.random.normal(k_w, (out_features, in_features), dtype=jnp.float32)
    bias = jax.random.normal(k_b, (out_features,), dtype=jnp.float32)

    y = jax.block_until_ready(ternary_linear(x, weight, bias))
    y_ref = ternary_linear_ref(x, weight, bias)
    assert y.shape == (batch, out_features)
    assert jnp.allclose(y, y_ref, atol=2e-2, rtol=2e-2), "mismatch vs reference (test 1)"

    # Test 2: exercises the tiled multi-step accumulator + padding path (grid 2x2x2).
    b2, k2d, n2 = 16, 200, 192
    x2 = jax.random.normal(k_x2, (b2, k2d), dtype=jnp.float32)
    w2 = jax.random.normal(k_w2, (n2, k2d), dtype=jnp.float32)
    bias2 = jax.random.normal(k_b2, (n2,), dtype=jnp.float32)

    y2 = jax.block_until_ready(ternary_linear(x2, w2, bias2, tm=8, tn=128, tk=128))
    y2_ref = ternary_linear_ref(x2, w2, bias2)
    assert y2.shape == (b2, n2)
    assert jnp.allclose(y2, y2_ref, atol=2e-2, rtol=2e-2), "mismatch vs reference (test 2)"

    print("KERNEL_OK")
</pallas_src>

<mosaic_0001>
module attributes {stable_mosaic.version = 11 : i64} {
  func.func @_ternary_matmul_kernel(%arg0: i32, %arg1: i32, %arg2: i32, %arg3: memref<2xf32, #tpu.memory_space<smem>>, %arg4: memref<8x128xf32, #tpu.memory_space<vmem>>, %arg5: memref<128x128xf32, #tpu.memory_space<vmem>>, %arg6: memref<1x128xf32, #tpu.memory_space<vmem>>, %arg7: memref<8x128xf32, #tpu.memory_space<vmem>>, %arg8: memref<8x128xf32, #tpu.memory_space<vmem>>) attributes {dimension_semantics = [#tpu.dimension_semantics<parallel>, #tpu.dimension_semantics<parallel>, #tpu.dimension_semantics<arbitrary>], iteration_bounds = array<i64: 1, 1, 1>, scalar_prefetch = 0 : i64, scratch_operands = 1 : i64, tpu.core_type = #tpu.core_type<tc>, window_params = [{transform_indices = @transform_0, window_bounds = array<i64: 2>}, {transform_indices = @transform_1, window_bounds = array<i64: 8, 128>}, {transform_indices = @transform_2, window_bounds = array<i64: 128, 128>}, {transform_indices = @transform_3, window_bounds = array<i64: 1, 128>}, {transform_indices = @transform_4, window_bounds = array<i64: 8, 128>}]} {
    %c0_i32 = arith.constant 0 : i32
    %0 = arith.cmpi eq, %arg2, %c0_i32 : i32
    %1 = arith.extui %0 : i1 to i32
    %c0_i32_0 = arith.constant 0 : i32
    %2 = arith.cmpi ne, %1, %c0_i32_0 : i32
    scf.if %2 {
      %cst_12 = arith.constant 0.000000e+00 : f32
      %23 = vector.broadcast %cst_12 : f32 to vector<8x128xf32>
      %c0_13 = arith.constant 0 : index
      %c0_14 = arith.constant 0 : index
      %24 = vector.load %arg8[%c0_13, %c0_14] : memref<8x128xf32, #tpu.memory_space<vmem>>, vector<8x128xf32>
      tpu.vector_store %arg8[%c0_13, %c0_14], %23 {strides = array<i32>} : memref<8x128xf32, #tpu.memory_space<vmem>>, vector<8x128xf32>,
    } else {
    }
    %c0 = arith.constant 0 : index
    %3 = memref.load %arg3[%c0] : memref<2xf32, #tpu.memory_space<smem>>
    %c0_1 = arith.constant 0 : index
    %c0_2 = arith.constant 0 : index
    %4 = vector.load %arg5[%c0_1, %c0_2] : memref<128x128xf32, #tpu.memory_space<vmem>>, vector<128x128xf32>
    %5 = vector.broadcast %3 : f32 to vector<128x128xf32>
    %6 = arith.cmpf ogt, %4, %5 : vector<128x128xf32>
    %7 = arith.extui %6 : vector<128x128xi1> to vector<128x128xi32>
    %8 = arith.sitofp %7 : vector<128x128xi32> to vector<128x128xf32>
    %cst = arith.constant 0.000000e+00 : f32
    %9 = arith.subf %cst, %3 : f32
    %10 = vector.broadcast %9 : f32 to vector<128x128xf32>
    %11 = arith.cmpf olt, %4, %10 : vector<128x128xf32>
    %12 = arith.extui %11 : vector<128x128xi1> to vector<128x128xi32>
    %13 = arith.sitofp %12 : vector<128x128xi32> to vector<128x128xf32>
    %14 = arith.subf %8, %13 : vector<128x128xf32>
    %c0_3 = arith.constant 0 : index
    %c0_4 = arith.constant 0 : index
    %15 = vector.load %arg4[%c0_3, %c0_4] : memref<8x128xf32, #tpu.memory_space<vmem>>, vector<8x128xf32>
    %c0_5 = arith.constant 0 : index
    %c0_6 = arith.constant 0 : index
    %16 = vector.load %arg8[%c0_5, %c0_6] : memref<8x128xf32, #tpu.memory_space<vmem>>, vector<8x128xf32>
    %cst_7 = arith.constant dense<0.000000e+00> : vector<8x128xf32>
    %17 = tpu.matmul %15, %14, %cst_7 {dimension_numbers = #tpu.dot_dimension_numbers<[1], [0], [0], [1], [0, 0, 1, 1], [], []>} : vector<8x128xf32>, vector<128x128xf32>, vector<8x128xf32> -> vector<8x128xf32>
    %18 = arith.addf %16, %17 : vector<8x128xf32>
    %c0_8 = arith.constant 0 : index
    %c0_9 = arith.constant 0 : index
    %19 = vector.load %arg8[%c0_8, %c0_9] : memref<8x128xf32, #tpu.memory_space<vmem>>, vector<8x128xf32>
    tpu.vector_store %arg8[%c0_8, %c0_9], %18 {strides = array<i32>} : memref<8x128xf32, #tpu.memory_space<vmem>>, vector<8x128xf32>,
    %c0_i32_10 = arith.constant 0 : i32
    %20 = arith.cmpi eq, %arg2, %c0_i32_10 : i32
    %21 = arith.extui %20 : i1 to i32
    %c0_i32_11 = arith.constant 0 : i32
    %22 = arith.cmpi ne, %21, %c0_i32_11 : i32
    scf.if %22 {
      %c1 = arith.constant 1 : index
      %23 = memref.load %arg3[%c1] : memref<2xf32, #tpu.memory_space<smem>>
      %c0_12 = arith.constant 0 : index
      %c0_13 = arith.constant 0 : index
      %24 = vector.load %arg8[%c0_12, %c0_13] : memref<8x128xf32, #tpu.memory_space<vmem>>, vector<8x128xf32>
      %25 = vector.broadcast %23 : f32 to vector<8x128xf32>
      %26 = arith.mulf %25, %24 : vector<8x128xf32>
      %c0_14 = arith.constant 0 : index
      %c0_15 = arith.constant 0 : index
      %27 = vector.load %arg6[%c0_14, %c0_15] : memref<1x128xf32, #tpu.memory_space<vmem>>, vector<1x128xf32>
      %28 = vector.broadcast %27 : vector<1x128xf32> to vector<8x128xf32>
      %29 = arith.addf %26, %28 : vector<8x128xf32>
      %c0_16 = arith.constant 0 : index
      %c0_17 = arith.constant 0 : index
      %30 = vector.load %arg7[%c0_16, %c0_17] : memref<8x128xf32, #tpu.memory_space<vmem>>, vector<8x128xf32>
      tpu.vector_store %arg7[%c0_16, %c0_17], %29 {strides = array<i32>} : memref<8x128xf32, #tpu.memory_space<vmem>>, vector<8x128xf32>,
    } else {
    }
    return
  }
  func.func @transform_0(%arg0: i32, %arg1: i32, %arg2: i32) -> i32 {
    %c0_i32 = arith.constant 0 : i32
    %c0_i32_0 = arith.constant 0 : i32
    return %c0_i32 : i32
  }
  func.func @transform_1(%arg0: i32, %arg1: i32, %arg2: i32) -> (i32, i32) {
    %c0_i32 = arith.constant 0 : i32
    return %arg0, %arg2 : i32, i32
  }
  func.func @transform_2(%arg0: i32, %arg1: i32, %arg2: i32) -> (i32, i32) {
    %c0_i32 = arith.constant 0 : i32
    return %arg2, %arg1 : i32, i32
  }
  func.func @transform_3(%arg0: i32, %arg1: i32, %arg2: i32) -> (i32, i32) {
    %c0_i32 = arith.constant 0 : i32
    %c0_i32_0 = arith.constant 0 : i32
    return %c0_i32, %arg1 : i32, i32
  }
  func.func @transform_4(%arg0: i32, %arg1: i32, %arg2: i32) -> (i32, i32) {
    %c0_i32 = arith.constant 0 : i32
    return %arg0, %arg1 : i32, i32
  }
}

</mosaic_0001>

<bundles_post_ra>
// kernel: tpu_custom_call.1
= control target key start
LH: loop header
LB: loop body
LE: loop exit
PB: predicated region body
PF: predicated region fallthrough
CT: control target
= control target key end

     0   :  { %9 = vsyncpa [#allocation6], 0  ;;  %s664_s0 = inlined_call_operand.hbm [shape: f32[2], index: 0, kind: input, shape index: {}]   ;;  %s665_s1 = inlined_call_operand.hbm [shape: f32[8,128], index: 1, kind: input, shape index: {}]   ;;  %s666_s2 = inlined_call_operand.hbm [shape: f32[128,128], index: 2, kind: input, shape index: {}]   ;;  %s667_s3 = inlined_call_operand.vmem [shape: f32[1,128], index: 3, kind: input, shape index: {}]   ;;  %s668_s4 = inlined_call_operand.hbm [shape: f32[8,128], index: 4, kind: output, shape index: {}]  }
   0x1   :  { %10 = vsyncpa [#allocation4], 0 }
   0x2   :  { %11 = vsyncpa [#allocation9], 0 }
   0x3   :  { %12 = vsyncpa [#allocation5], 0  ;;  %s418_s17 = scalar_lea.hbm %s664_s0, 16 }
   0x4   :  { %p419_p0 = scmp.ne.s32.totalorder %s664_s0, %s418_s17  ;;  %p422_p1 = scmp.lt.u32.totalorder %s418_s17, %s664_s0 }
   0x6   :  { %p424_p2 = pnand %p422_p1, %p419_p0 }
   0x8   :  { %427 = shalt.err (!%p424_p2)
}
   0x9   :  { %s502_s22 = smov [#allocation3]   ;;  %s503_s25 = smov [#allocation7]  }
   0xa   :  { %20 = dma.hbm_to_smem %s664_s0, 16, %s502_s22, [#allocation6]  }
   0xb   :  { %s27_s26 = sshll.u32 %s503_s25, 4  ;;  %s504_s27 = smov [#allocation8]   ;;  %s28_s26 = int_to_ptr.vmem [resolvable:$true] %s27_s26 }
   0xc   :  { %s36_s28 = sshll.u32 %s504_s27, 4  ;;  %s428_s5 = scalar_lea.hbm %s665_s1, 128  ;;  %s37_s28 = int_to_ptr.vmem [resolvable:$true] %s36_s28 }
   0xd   :  { %p429_p3 = scmp.ne.s32.totalorder %s665_s1, %s428_s5  ;;  %p432_p4 = scmp.lt.u32.totalorder %s428_s5, %s665_s1 }
   0xf   :  { %p434_p5 = pnand %p432_p4, %p429_p3 }
  0x11   :  { %437 = shalt.err (!%p434_p5)
}
  0x12   :  { %s438_s0 = scalar_lea.vmem %s28_s26, 128  ;;  %p443_p7 = scmp.lt.s32.totalorder %s28_s26, %s28_s26 }
  0x13   :  { %p439_p6 = scmp.ne.s32.totalorder %s28_s26, %s438_s0  ;;  %p444_p8 = scmp.lt.s32.totalorder %s438_s0, %s438_s0 }
  0x15   :  { %p445_p9 = por %p444_p8, %p443_p7 }
  0x17   :  { %p446_p10 = pnand %p445_p9, %p439_p6 }
  0x19   :  { %449 = shalt.err (!%p446_p10)
}
  0x1a   :  { %30 = dma.hbm_to_vmem [thread:$0]  %s665_s1, 128, %s28_s26, [#allocation4]  }
  0x1b   :  { %s450_s14 = scalar_lea.hbm %s666_s2, 2048 }
  0x1c   :  { %p451_p11 = scmp.ne.s32.totalorder %s666_s2, %s450_s14  ;;  %p454_p12 = scmp.lt.u32.totalorder %s450_s14, %s666_s2 }
  0x1e   :  { %p456_p13 = pnand %p454_p12, %p451_p11 }
  0x20   :  { %459 = shalt.err (!%p456_p13)
}
  0x21   :  { %s460_s19 = scalar_lea.vmem %s37_s28, 2048  ;;  %p465_p1 = scmp.lt.s32.totalorder %s37_s28, %s37_s28 }
  0x22   :  { %p461_p0 = scmp.ne.s32.totalorder %s37_s28, %s460_s19  ;;  %p466_p2 = scmp.lt.s32.totalorder %s460_s19, %s460_s19 }
  0x24   :  { %p467_p3 = por %p466_p2, %p465_p1 }
  0x26   :  { %p468_p4 = pnand %p467_p3, %p461_p0 }
  0x28   :  { %471 = shalt.err (!%p468_p4)
}
  0x29   :  { %s505_s1 = smov 128   ;;  %s506_s20 = smov 8  }
  0x2a   :  { %42 = dma.hbm_to_vmem [thread:$0]  %s666_s2, 2048, %s37_s28, [#allocation9], %s505_s1, %s505_s1, %s506_s20  }
  0x2b   :  { %494 = dma.done.wait [#allocation6], 16  }
  0x2c   :  { %495 = vsyncadd [#allocation6], 4294967280 }
  0x2d   :  { %496 = dma.done.wait [#allocation4], 128  }
  0x2e   :  { %497 = vsyncadd [#allocation4], 4294967168 }
  0x2f   :  { %498 = dma.done.wait [#allocation9], 2048  }
  0x30   :  { %499 = vsyncadd [#allocation9], 4294965248 }
  0x31   :  { %54 = sfence }
  0x32   :  { %s60_s23 = sld [smem:[#allocation3]]  ;;  %v507_v0 = vmov 0.0|0.0   ;;  %vm508_vm0 = vmmov 0   ;;  %v509_v1 = vmov 0.0   ;;  %v61_v2 = vld [vmem:[#allocation8] sm:$0xff]  ;;  %v62_v3 = vld [vmem:[#allocation8 + $0x8] sm:$0xff] }
  0x33   :  { %385 = vmatprep.subr.bf16.mxu0 %v507_v0  ;;  %382 = vmatprep.mubr.msk.f32.mxu0 %vm508_vm0, %v509_v1  ;;  %v63_v4 = vld [vmem:[#allocation8 + $0x10] sm:$0xff]  ;;  %v64_v5 = vld [vmem:[#allocation8 + $0x18] sm:$0xff]  ;;  %v65_v12 = vld [vmem:[#allocation8 + $0x20] sm:$0xff]  ;;  %s331_s24 = sld [smem:[#allocation3 + $0x1]]  ;;  %s510_s27 = smov [#allocation10]  }
  0x34   :  { %v66_v13 = vld [vmem:[#allocation8 + $0x28] sm:$0xff]  ;;  %v67_v21 = vld [vmem:[#allocation8 + $0x30] sm:$0xff]  ;;  %v68_v23 = vld [vmem:[#allocation8 + $0x38] sm:$0xff]  ;;  %s288_s28 = sshll.u32 %s510_s27, 4  ;;  %s289_s28 = int_to_ptr.vmem [resolvable:$true] %s288_s28 }
  0x35   :  { %v69_v29 = vld [vmem:[#allocation8 + $0x40] sm:$0xff]  ;;  %v70_v30 = vld [vmem:[#allocation8 + $0x48] sm:$0xff]  ;;  %v71_v39 = vld [vmem:[#allocation8 + $0x50] sm:$0xff]  ;;  %s472_s29 = scalar_lea.vmem %s289_s28, 128  ;;  %p477_p6 = scmp.lt.s32.totalorder %s289_s28, %s289_s28 }
  0x36   :  { %v72_v40 = vld [vmem:[#allocation8 + $0x58] sm:$0xff]  ;;  %v73_v47 = vld [vmem:[#allocation8 + $0x60] sm:$0xff]  ;;  %v74_v48 = vld [vmem:[#allocation8 + $0x68] sm:$0xff]  ;;  %p473_p5 = scmp.ne.s32.totalorder %s289_s28, %s472_s29  ;;  %p478_p7 = scmp.lt.s32.totalorder %s472_s29, %s472_s29 }
  0x37   :  { %v75_v56 = vld [vmem:[#allocation8 + $0x70] sm:$0xff]  ;;  %v76_v57 = vld [vmem:[#allocation8 + $0x78] sm:$0xff] }
  0x38   :  { %v574_v6 = vstv %s60_s23  ;;  %s126_s2 = ssub.f32 0.0, %s60_s23  ;;  %p479_p8 = por %p478_p7, %p477_p6 }
  0x39   :  { %vm78_vm1 = vcmp.gt.f32.partialorder %v61_v2, %v574_v6  ;;  %vm79_vm2 = vcmp.gt.f32.partialorder %v62_v3, %v574_v6  ;;  %vm80_vm3 = vcmp.gt.f32.partialorder %v63_v4, %v574_v6  ;;  %vm81_vm4 = vcmp.gt.f32.partialorder %v64_v5, %v574_v6 }
  0x3a   :  { %v299_v7 = vsel %vm78_vm1, 1.0, %v509_v1  ;;  %v300_v8 = vsel %vm79_vm2, 1.0, %v509_v1  ;;  %v582_v9 = vstv %s126_s2  ;;  %v301_v10 = vsel %vm80_vm3, 1.0, %v509_v1  ;;  %p480_p9 = pnand %p479_p8, %p473_p5 }
  0x3b   :  { %vm128_vm5 = vcmp.lt.f32.partialorder %v61_v2, %v582_v9  ;;  %vm129_vm6 = vcmp.lt.f32.partialorder %v62_v3, %v582_v9  ;;  %v302_v11 = vsel %vm81_vm4, 1.0, %v509_v1  ;;  %vm130_vm7 = vcmp.lt.f32.partialorder %v63_v4, %v582_v9 }
  0x3c   :  { %v315_v14 = vsel %vm128_vm5, 1.0, %v509_v1  ;;  %v316_v15 = vsel %vm129_vm6, 1.0, %v509_v1  ;;  %vm131_vm8 = vcmp.lt.f32.partialorder %v64_v5, %v582_v9  ;;  %v317_v16 = vsel %vm130_vm7, 1.0, %v509_v1 }
  0x3d   :  { %v176_v17 = vsub.f32 %v299_v7, %v315_v14  ;;  %v177_v18 = vsub.f32 %v300_v8, %v316_v15  ;;  %v318_v19 = vsel %vm131_vm8, 1.0, %v509_v1  ;;  %v178_v20 = vsub.f32 %v301_v10, %v317_v16  ;;  %v192_v14 = vld [vmem:[#allocation7] sm:$0xff] }
  0x3e   :  { %v179_v22 = vsub.f32 %v302_v11, %v318_v19  ;;  %vm82_vm9 = vcmp.gt.f32.partialorder %v65_v12, %v574_v6  ;;  %vm83_vm10 = vcmp.gt.f32.partialorder %v66_v13, %v574_v6  ;;  %vm132_vm11 = vcmp.lt.f32.partialorder %v65_v12, %v582_v9 }
  0x3f   :  { %v386_v24 = vpack.c.bf16 %v177_v18, %v176_v17  ;;  %v303_v25 = vsel %vm82_vm9, 1.0, %v509_v1  ;;  %v304_v26 = vsel %vm83_vm10, 1.0, %v509_v1  ;;  %vm133_vm12 = vcmp.lt.f32.partialorder %v66_v13, %v582_v9 }
  0x40   :  { %v319_v27 = vsel %vm132_vm11, 1.0, %v509_v1  ;;  %v320_v28 = vsel %vm133_vm12, 1.0, %v509_v1  ;;  %vm84_vm13 = vcmp.gt.f32.partialorder %v67_v21, %v574_v6  ;;  %v389_v31 = vpack.c.bf16 %v179_v22, %v178_v20 }
  0x41   :  { %387 = vmatpush3.bf16.msra.mxu0 %v386_v24  ;;  %v180_v32 = vsub.f32 %v303_v25, %v319_v27  ;;  %v181_v33 = vsub.f32 %v304_v26, %v320_v28  ;;  %vm85_vm14 = vcmp.gt.f32.partialorder %v68_v23, %v574_v6  ;;  %v305_v34 = vsel %vm84_vm13, 1.0, %v509_v1 }
  0x42   :  { %388 = vmatprep.subr.bf16.mxu0 %v507_v0  ;;  %v306_v35 = vsel %vm85_vm14, 1.0, %v509_v1  ;;  %vm134_vm15 = vcmp.lt.f32.partialorder %v67_v21, %v582_v9  ;;  %vm135_vm0 = vcmp.lt.f32.partialorder %v68_v23, %v582_v9  ;;  %vm86_vm1 = vcmp.gt.f32.partialorder %v69_v29, %v574_v6 }
  0x43   :  { %v321_v36 = vsel %vm134_vm15, 1.0, %v509_v1  ;;  %v322_v37 = vsel %vm135_vm0, 1.0, %v509_v1  ;;  %vm87_vm2 = vcmp.gt.f32.partialorder %v70_v30, %v574_v6  ;;  %v392_v38 = vpack.c.bf16 %v181_v33, %v180_v32 }
  0x44   :  { %v182_v41 = vsub.f32 %v305_v34, %v321_v36  ;;  %v183_v42 = vsub.f32 %v306_v35, %v322_v37  ;;  %vm136_vm3 = vcmp.lt.f32.partialorder %v69_v29, %v582_v9  ;;  %vm137_vm4 = vcmp.lt.f32.partialorder %v70_v30, %v582_v9 }
  0x45   :  { %390 = vmatpush3.bf16.msra.mxu0 %v389_v31  ;;  %v307_v43 = vsel %vm86_vm1, 1.0, %v509_v1  ;;  %v308_v44 = vsel %vm87_vm2, 1.0, %v509_v1  ;;  %v323_v45 = vsel %vm136_vm3, 1.0, %v509_v1  ;;  %v324_v46 = vsel %vm137_vm4, 1.0, %v509_v1 }
  0x46   :  { %391 = vmatprep.subr.bf16.mxu0 %v507_v0  ;;  %vm88_vm5 = vcmp.gt.f32.partialorder %v71_v39, %v574_v6  ;;  %vm89_vm6 = vcmp.gt.f32.partialorder %v72_v40, %v574_v6  ;;  %vm138_vm7 = vcmp.lt.f32.partialorder %v71_v39, %v582_v9  ;;  %vm139_vm8 = vcmp.lt.f32.partialorder %v72_v40, %v582_v9 }
  0x47   :  { %v395_v49 = vpack.c.bf16 %v183_v42, %v182_v41  ;;  %v184_v50 = vsub.f32 %v307_v43, %v323_v45  ;;  %v185_v51 = vsub.f32 %v308_v44, %v324_v46  ;;  %v309_v52 = vsel %vm88_vm5, 1.0, %v509_v1 }
  0x48   :  { %v310_v53 = vsel %vm89_vm6, 1.0, %v509_v1  ;;  %v325_v54 = vsel %vm138_vm7, 1.0, %v509_v1  ;;  %v326_v55 = vsel %vm139_vm8, 1.0, %v509_v1  ;;  %vm90_vm9 = vcmp.gt.f32.partialorder %v73_v47, %v574_v6 }
  0x49   :  { %393 = vmatpush3.bf16.msra.mxu0 %v392_v38  ;;  %vm91_vm10 = vcmp.gt.f32.partialorder %v74_v48, %v574_v6  ;;  %vm140_vm11 = vcmp.lt.f32.partialorder %v73_v47, %v582_v9  ;;  %vm141_vm12 = vcmp.lt.f32.partialorder %v74_v48, %v582_v9  ;;  %v398_v58 = vpack.c.bf16 %v185_v51, %v184_v50 }
  0x4a   :  { %394 = vmatprep.subr.bf16.mxu0 %v507_v0  ;;  %v186_v59 = vsub.f32 %v309_v52, %v325_v54  ;;  %v187_v60 = vsub.f32 %v310_v53, %v326_v55  ;;  %v311_v61 = vsel %vm90_vm9, 1.0, %v509_v1  ;;  %v312_v62 = vsel %vm91_vm10, 1.0, %v509_v1 }
  0x4b   :  { %v327_v63 = vsel %vm140_vm11, 1.0, %v509_v1  ;;  %v328_v2 = vsel %vm141_vm12, 1.0, %v509_v1  ;;  %vm92_vm13 = vcmp.gt.f32.partialorder %v75_v56, %v574_v6  ;;  %vm93_vm14 = vcmp.gt.f32.partialorder %v76_v57, %v574_v6 }
  0x4c   :  { %vm142_vm15 = vcmp.lt.f32.partialorder %v75_v56, %v582_v9  ;;  %vm143_vm0 = vcmp.lt.f32.partialorder %v76_v57, %v582_v9  ;;  %v401_v3 = vpack.c.bf16 %v187_v60, %v186_v59  ;;  %v188_v4 = vsub.f32 %v311_v61, %v327_v63 }
  0x4d   :  { %396 = vmatpush3.bf16.msra.mxu0 %v395_v49  ;;  %v189_v5 = vsub.f32 %v312_v62, %v328_v2  ;;  %v313_v7 = vsel %vm92_vm13, 1.0, %v509_v1  ;;  %v314_v8 = vsel %vm93_vm14, 1.0, %v509_v1  ;;  %v329_v10 = vsel %vm142_vm15, 1.0, %v509_v1 }
  0x4e   :  { %397 = vmatprep.subr.bf16.mxu0 %v507_v0  ;;  %v330_v11 = vsel %vm143_vm0, 1.0, %v509_v1  ;;  %v190_v12 = vsub.f32 %v313_v7, %v329_v10  ;;  %v271_v15 = vstv %s331_s24  ;;  %v332_v1 = vld [vmem:[%s667_s3] ss:$0 sm:$0xff] }
  0x4f   :  { %v404_v6 = vpack.c.bf16 %v189_v5, %v188_v4  ;;  %v191_v13 = vsub.f32 %v314_v8, %v330_v11 }
  0x51   :  { %399 = vmatpush3.bf16.msra.mxu0 %v398_v58  ;;  %v407_v9 = vpack.c.bf16 %v191_v13, %v190_v12 }
  0x52   :  { %400 = vmatprep.subr.bf16.mxu0 %v507_v0 }
  0x55   :  { %402 = vmatpush3.bf16.msra.mxu0 %v401_v3 }
  0x56   :  { %403 = vmatprep.subr.bf16.mxu0 %v507_v0 }
  0x59   :  { %405 = vmatpush3.bf16.msra.mxu0 %v404_v6 }
  0x5a   :  { %406 = vmatprep.subr.bf16.mxu0 %v507_v0 }
  0x5d   :  { %408 = vmatpush3.bf16.msra.mxu0 %v407_v9 }
  0x60   :  { %383 = vmatmul.mubr.f32.vlgmr.msra.gmra.mrb[0].mxu0 %v192_v14 }
 0x133   :  { %v260_v16 = vpop.f32.mrb[0].mxu0 }
 0x134   :  { %v272_v17 = vmul.f32 %v271_v15, %v260_v16  ;;  %v384_v18 = vpop.f32.mrb[1].mxu0 }
 0x136   :  { %v280_v19 = vadd.f32 %v332_v1, %v272_v17 }
 0x138   :  { %281 = vst [vmem:[#allocation10] sm:$0xff] %v280_v19 }
 0x139   :  { %483 = shalt.err (!%p480_p9)
}
 0x13a   :  { %s484_s6 = scalar_lea.hbm %s668_s4, 128 }
 0x13b   :  { %p485_p10 = scmp.ne.s32.totalorder %s668_s4, %s484_s6  ;;  %p488_p11 = scmp.lt.u32.totalorder %s484_s6, %s668_s4 }
 0x13d   :  { %p490_p12 = pnand %p488_p11, %p485_p10 }
 0x13f   :  { %493 = shalt.err (!%p490_p12)
}
 0x140   :  { %291 = dma.vmem_to_hbm [thread:$0]  %s289_s28, 128, %s668_s4, [#allocation5]  }
 0x141   :  { %500 = dma.done.wait [#allocation5], 128  }
 0x142   :  { %501 = vsyncadd [#allocation5], 4294967168 }
 0x143   :  { %295 = vsyncpa [#allocation4], 1 }
 0x144   :  { %296 = vsyncpa [#allocation9], 1 }
 0x145   :  { %297 = vsyncpa [#allocation5], 1 }
 0x146   :  { %298 = vsyncpa [#allocation6], 1 }

</bundles_post_ra>
